<compile_context>
chip_gen: v6e
topology: v6e:2x2x1
jax: 0.10.0
libtpu: 0.0.40
codegen_flags: <defaults>
</compile_context>

<pallas_src>
import functools
import math

import jax
import jax.numpy as jnp
from jax.experimental import pallas as pl
from jax.experimental.pallas import tpu as pltpu


_TARGET_BLOCK_BYTES = 4 * 1024 * 1024     # per-buffer VMEM budget (safe on v5e/v6e/v7x)
_MAX_UNIT_ROWS = 4096                     # cap on the per-image mask tile (2 MiB f32)
_VMEM_LIMIT_BYTES = 48 * 1024 * 1024


def _shift_up(x, shift, axis):
    """y[..., i, ...] = x[..., (i + shift) % size, ...]  (circular shift by -shift)."""
    size = x.shape[axis]
    shift = shift % size
    if shift == 0:
        return x
    if jax.default_backend() == "tpu":
        # Native XLU rotation; pltpu.roll matches np.roll semantics and needs axis >= 0.
        return pltpu.roll(x, shift=size - shift, axis=axis)
    # Interpret / non-TPU path with identical semantics.
    return jnp.roll(x, shift=-shift, axis=axis)


# ---------------------------------------------------------------------------
# Lane-dense kernel: x viewed as (M, 128) flat rows of the NCHW tensor.
# ---------------------------------------------------------------------------
def _tv_flat_kernel(mh_ref, mw_ref, x_ref, h_ref, w_ref, *,
                    W, tm, unit, n_blocks, n_steps):
    c = pl.program_id(0)          # TensorCore split ("parallel")
    i = pl.program_id(1)          # sequential steps within a core ("arbitrary")

    @pl.when(i == 0)
    def _init():
        h_ref[...] = jnp.zeros_like(h_ref)
        w_ref[...] = jnp.zeros_like(w_ref)

    @pl.when(c * n_steps + i < n_blocks)     # skip clamped duplicate steps
    def _step():
        x = x_ref[...].astype(jnp.float32)                 # (tm, 128)
        k = tm // unit                                     # image-periods per block
        q, rem = divmod(W, 128)
        # A lane-127 element can sit mid image-row only if W does not divide 128.
        need_wb = (128 % W != 0)
        lane = None
        if need_wb or rem != 0:
            lane = jax.lax.broadcasted_iota(jnp.int32, (tm, 128), 1)

        # ---- W direction: neighbour is the next flat element -----------------
        a_w = _shift_up(x, 1, axis=1)                      # same flat row, +1 lane
        if need_wb:
            b_w = _shift_up(a_w, 1, axis=0)                # lane 127 -> next flat row
            nw = jnp.where(lane == 127, b_w, a_w)
        else:
            nw = a_w                                       # lane 127 is w == W-1 (masked)
        dw = nw - x

        # ---- H direction: neighbour is W flat elements later ------------------
        if rem == 0:
            nh = _shift_up(x, q, axis=0)                   # +W == +q flat rows
        else:
            a_h = _shift_up(x, rem, axis=1)
            c1 = a_h if q == 0 else _shift_up(a_h, q, axis=0)
            c2 = _shift_up(a_h, q + 1, axis=0)
            nh = jnp.where(lane < 128 - rem, c1, c2)
        dh = nh - x

        # Masks are exactly `unit`-periodic in flat rows, so fold the k periods
        # of the block first, apply the (unit, 128) mask once, then fold to the
        # resident lane-dense (8, 128) accumulator.
        def masked_sum(d, m_ref):
            t = d * d
            if k > 1:
                t = jnp.sum(t.reshape(k, unit, 128), axis=0)
            t = t * m_ref[...]
            return jnp.sum(t.reshape(unit // 8, 8, 128), axis=0)

        h_ref[0] += masked_sum(dh, mh_ref)
        w_ref[0] += masked_sum(dw, mw_ref)


def _tv_sums_lane_dense(x2d, H, W):
    M = x2d.shape[0]
    p = (H * W) // 128                       # flat rows per (b, c) image
    unit = math.lcm(p, 8)                    # mask tile height (multiple of 8)
    assert M % unit == 0 and unit % 8 == 0   # guaranteed by the gate in tv_loss
    n_units = M // unit
    itemsize = x2d.dtype.itemsize
    target_units = max(1, _TARGET_BLOCK_BYTES // (unit * 128 * itemsize))
    k = min(n_units, target_units)
    # Prefer a k that tiles n_units exactly (no ragged tail -> no padding copy).
    for cand in range(k, max(1, k // 2) - 1, -1):
        if n_units % cand == 0:
            k = cand
            break
    tm = k * unit
    n_blocks = -(-n_units // k)
    if n_blocks * tm != M:
        # Ragged tail: zero-pad.  Padded rows contribute exactly 0 (their finite
        # differences are 0-0, and wrap-around reads land on masked positions).
        x2d = jnp.pad(x2d, ((0, n_blocks * tm - M), (0, 0)))
    n_steps = -(-n_blocks // 2)              # split blocks across two cores

    # Validity masks over one image period (unit flat rows of 128 elements).
    r = jnp.arange(unit, dtype=jnp.int32)[:, None]
    l = jnp.arange(128, dtype=jnp.int32)[None, :]
    g = r * 128 + l
    mask_w = ((g % W) != (W - 1)).astype(jnp.float32)
    mask_h = (((g // W) % H) != (H - 1)).astype(jnp.float32)

    kernel = functools.partial(_tv_flat_kernel, W=W, tm=tm, unit=unit,
                               n_blocks=n_blocks, n_steps=n_steps)
    n_elems = M * 128
    h_parts, w_parts = pl.pallas_call(
        kernel,
        out_shape=(
            jax.ShapeDtypeStruct((2, 8, 128), jnp.float32),
            jax.ShapeDtypeStruct((2, 8, 128), jnp.float32),
        ),
        grid_spec=pltpu.PrefetchScalarGridSpec(
            num_scalar_prefetch=0,
            grid=(2, n_steps),
            in_specs=[
                pl.BlockSpec((unit, 128), lambda c, i: (0, 0)),    # mask_h (resident)
                pl.BlockSpec((unit, 128), lambda c, i: (0, 0)),    # mask_w (resident)
                pl.BlockSpec(
                    (tm, 128),
                    lambda c, i: (jnp.minimum(c * n_steps + i, n_blocks - 1), 0),
                ),
            ],
            out_specs=[
                pl.BlockSpec((1, 8, 128), lambda c, i: (c, 0, 0)),
                pl.BlockSpec((1, 8, 128), lambda c, i: (c, 0, 0)),
            ],
        ),
        compiler_params=pltpu.CompilerParams(
            dimension_semantics=("parallel", "arbitrary"),
            vmem_limit_bytes=_VMEM_LIMIT_BYTES,
        ),
        cost_estimate=pl.CostEstimate(
            flops=10 * n_elems,
            transcendentals=0,
            bytes_accessed=n_elems * itemsize + 2 * unit * 128 * 4
            + 2 * 2 * 8 * 128 * 4,
        ),
    )(mask_h, mask_w, x2d)
    return jnp.sum(h_parts), jnp.sum(w_parts)


# ---------------------------------------------------------------------------
# General fallback: many (H, W) slices per grid step, any shape/dtype.
# ---------------------------------------------------------------------------
def _tv_slice_kernel(x_ref, h_ref, w_ref, *, H, W):
    i = pl.program_id(0)

    @pl.when(i == 0)
    def _init():
        h_ref[...] = jnp.zeros_like(h_ref)
        w_ref[...] = jnp.zeros_like(w_ref)

    x = x_ref[...].astype(jnp.float32)       # (TB, H, W)
    if H > 1:
        dh = x[:, 1:, :] - x[:, :-1, :]
        h_ref[...] += jnp.sum(dh * dh).reshape(1, 1)
    if W > 1:
        dw = x[:, :, 1:] - x[:, :, :-1]
        w_ref[...] += jnp.sum(dw * dw).reshape(1, 1)


def _tv_sums_general(x3, H, W):
    BC = x3.shape[0]
    slice_bytes = max(1, H * W * x3.dtype.itemsize)
    tb = 1
    for cand in range(min(BC, max(1, _TARGET_BLOCK_BYTES // slice_bytes)), 0, -1):
        if BC % cand == 0:
            tb = cand
            break
    kernel = functools.partial(_tv_slice_kernel, H=H, W=W)
    h_tv, w_tv = pl.pallas_call(
        kernel,
        out_shape=(
            jax.ShapeDtypeStruct((1, 1), jnp.float32),
            jax.ShapeDtypeStruct((1, 1), jnp.float32),
        ),
        grid_spec=pltpu.PrefetchScalarGridSpec(
            num_scalar_prefetch=0,
            grid=(BC // tb,),
            in_specs=[pl.BlockSpec((tb, H, W), lambda i: (i, 0, 0))],
            out_specs=[
                pl.BlockSpec((1, 1), lambda i: (0, 0)),
                pl.BlockSpec((1, 1), lambda i: (0, 0)),
            ],
        ),
        compiler_params=pltpu.CompilerParams(
            dimension_semantics=("arbitrary",),
            vmem_limit_bytes=_VMEM_LIMIT_BYTES,
        ),
    )(x3)
    return h_tv[0, 0], w_tv[0, 0]


# ---------------------------------------------------------------------------
# Public entry point (matches the PyTorch TVLoss forward).
# ---------------------------------------------------------------------------
def tv_loss(x):
    """Total-variation loss for an NCHW tensor, matching the PyTorch module."""
    B, C, H, W = x.shape
    n = x.size
    p128 = (H * W) % 128 == 0
    unit = math.lcm((H * W) // 128, 8) if p128 else 0
    lane_dense = (
        (x.dtype == jnp.float32 or x.dtype == jnp.bfloat16)
        and p128
        and n % 1024 == 0
        and unit <= _MAX_UNIT_ROWS
    )

    if lane_dense:
        h_tv, w_tv = _tv_sums_lane_dense(x.reshape(n // 128, 128), H, W)
    else:
        # TODO(synk): very large single images (H*W*4B >> VMEM) would need an
        # H-tiled fallback with a one-row halo; not required for typical sizes.
        h_tv, w_tv = _tv_sums_general(x.reshape(B * C, H, W), H, W)

    # Static counts, identical to PyTorch's _tensor_size on the sliced tensors.
    # (H == 1 or W == 1 divides by zero, exactly like the PyTorch module.)
    count_h = C * (H - 1) * W
    count_w = C * H * (W - 1)
    return 2.0 * (h_tv / count_h + w_tv / count_w) / B


def _tv_loss_ref(x):
    B, C, H, W = x.shape
    h_tv = jnp.sum((x[:, :, 1:, :] - x[:, :, :-1, :]) ** 2)
    w_tv = jnp.sum((x[:, :, :, 1:] - x[:, :, :, :-1]) ** 2)
    count_h = C * (H - 1) * W
    count_w = C * H * (W - 1)
    return 2.0 * (h_tv / count_h + w_tv / count_w) / B


if __name__ == "__main__":
    key = jax.random.PRNGKey(0)
    tests = [
        (2, 4, 16, 16),    # lane-dense path, W a divisor of 128
        (1, 2, 16, 192),   # lane-dense path, general W (neither divisor nor multiple)
        (1, 1, 8, 256),    # lane-dense path, W a multiple of 128
        (2, 3, 16, 24),    # general fallback (element count not a multiple of 1024)
    ]
    for idx, shape in enumerate(tests):
        k = jax.random.fold_in(key, idx)
        x = jax.random.normal(k, shape, dtype=jnp.float32)
        out = tv_loss(x)
        jax.block_until_ready(out)
        ref = _tv_loss_ref(x)
        assert jnp.allclose(out, ref, rtol=1e-5, atol=1e-5), (shape, out, ref)

    print("KERNEL_OK")
</pallas_src>

<mosaic_0001>
module attributes {stable_mosaic.version = 11 : i64} {
  func.func @_tv_flat_kernel(%arg0: i32, %arg1: i32, %arg2: memref<8x128xf32, #tpu.memory_space<vmem>>, %arg3: memref<8x128xf32, #tpu.memory_space<vmem>>, %arg4: memref<16x128xf32, #tpu.memory_space<vmem>>, %arg5: memref<1x8x128xf32, #tpu.memory_space<vmem>>, %arg6: memref<1x8x128xf32, #tpu.memory_space<vmem>>) attributes {dimension_semantics = [#tpu.dimension_semantics<parallel>, #tpu.dimension_semantics<arbitrary>], iteration_bounds = array<i64: 2, 1>, scalar_prefetch = 0 : i64, scratch_operands = 0 : i64, tpu.core_type = #tpu.core_type<tc>, window_params = [{pipeline_mode = #tpu.pipeline_mode<synchronous>, transform_indices = @transform_0, window_bounds = array<i64: 8, 128>}, {pipeline_mode = #tpu.pipeline_mode<synchronous>, transform_indices = @transform_1, window_bounds = array<i64: 8, 128>}, {transform_indices = @transform_2, window_bounds = array<i64: 16, 128>}, {transform_indices = @transform_3, window_bounds = array<i64: 1, 8, 128>}, {transform_indices = @transform_4, window_bounds = array<i64: 1, 8, 128>}]} {
    %c0_i32 = arith.constant 0 : i32
    %0 = arith.cmpi eq, %arg1, %c0_i32 : i32
    %1 = arith.extui %0 : i1 to i32
    %c0_i32_0 = arith.constant 0 : i32
    %2 = arith.cmpi ne, %1, %c0_i32_0 : i32
    scf.if %2 {
      %cst = arith.constant 0.000000e+00 : f32
      %8 = vector.broadcast %cst : f32 to vector<1x8x128xf32>
      %c0 = arith.constant 0 : index
      %c0_3 = arith.constant 0 : index
      %c0_4 = arith.constant 0 : index
      %9 = vector.load %arg5[%c0, %c0_3, %c0_4] : memref<1x8x128xf32, #tpu.memory_space<vmem>>, vector<1x8x128xf32>
      tpu.vector_store %arg5[%c0, %c0_3, %c0_4], %8 {strides = array<i32>} : memref<1x8x128xf32, #tpu.memory_space<vmem>>, vector<1x8x128xf32>,
      %cst_5 = arith.constant 0.000000e+00 : f32
      %10 = vector.broadcast %cst_5 : f32 to vector<1x8x128xf32>
      %c0_6 = arith.constant 0 : index
      %c0_7 = arith.constant 0 : index
      %c0_8 = arith.constant 0 : index
      %11 = vector.load %arg6[%c0_6, %c0_7, %c0_8] : memref<1x8x128xf32, #tpu.memory_space<vmem>>, vector<1x8x128xf32>
      tpu.vector_store %arg6[%c0_6, %c0_7, %c0_8], %10 {strides = array<i32>} : memref<1x8x128xf32, #tpu.memory_space<vmem>>, vector<1x8x128xf32>,
    } else {
    }
    %c1_i32 = arith.constant 1 : i32
    %3 = arith.muli %arg0, %c1_i32 : i32
    %4 = arith.addi %3, %arg1 : i32
    %c1_i32_1 = arith.constant 1 : i32
    %5 = arith.cmpi slt, %4, %c1_i32_1 : i32
    %6 = arith.extui %5 : i1 to i32
    %c0_i32_2 = arith.constant 0 : i32
    %7 = arith.cmpi ne, %6, %c0_i32_2 : i32
    scf.if %7 {
      %c0 = arith.constant 0 : index
      %c0_3 = arith.constant 0 : index
      %8 = vector.load %arg4[%c0, %c0_3] : memref<16x128xf32, #tpu.memory_space<vmem>>, vector<16x128xf32>
      %9 = tpu.iota {dimensions = array<i32: 1>} : vector<16x128xi32>
      %10 = vector.extract_strided_slice %8 {offsets = [0, 1], sizes = [16, 127], strides = [1, 1]} : vector<16x128xf32> to vector<16x127xf32>
      %11 = vector.extract_strided_slice %8 {offsets = [0, 0], sizes = [16, 1], strides = [1, 1]} : vector<16x128xf32> to vector<16x1xf32>
      %12 = tpu.concatenate %10, %11 in 1 : vector<16x127xf32>, vector<16x1xf32> -> vector<16x128xf32>
      %13 = arith.subf %12, %8 : vector<16x128xf32>
      %14 = vector.extract_strided_slice %8 {offsets = [0, 16], sizes = [16, 112], strides = [1, 1]} : vector<16x128xf32> to vector<16x112xf32>
      %15 = vector.extract_strided_slice %8 {offsets = [0, 0], sizes = [16, 16], strides = [1, 1]} : vector<16x128xf32> to vector<16x16xf32>
      %16 = tpu.concatenate %14, %15 in 1 : vector<16x112xf32>, vector<16x16xf32> -> vector<16x128xf32>
      %17 = vector.extract_strided_slice %16 {offsets = [1, 0], sizes = [15, 128], strides = [1, 1]} : vector<16x128xf32> to vector<15x128xf32>
      %18 = vector.extract_strided_slice %16 {offsets = [0, 0], sizes = [1, 128], strides = [1, 1]} : vector<16x128xf32> to vector<1x128xf32>
      %19 = tpu.concatenate %17, %18 in 0 : vector<15x128xf32>, vector<1x128xf32> -> vector<16x128xf32>
      %c112_i32 = arith.constant 112 : i32
      %20 = vector.broadcast %c112_i32 : i32 to vector<16x128xi32>
      %21 = arith.cmpi slt, %9, %20 : vector<16x128xi32>
      %22 = arith.select %21, %16, %19 : vector<16x128xi1>, vector<16x128xf32>
      %23 = arith.subf %22, %8 : vector<16x128xf32>
      %c0_4 = arith.constant 0 : index
      %c0_5 = arith.constant 0 : index
      %c0_6 = arith.constant 0 : index
      %24 = vector.load %arg5[%c0_4, %c0_5, %c0_6] : memref<1x8x128xf32, #tpu.memory_space<vmem>>, vector<1x8x128xf32>
      %25 = vector.shape_cast %24 : vector<1x8x128xf32> to vector<8x128xf32>
      %26 = arith.mulf %23, %23 : vector<16x128xf32>
      %27 = vector.shape_cast %26 : vector<16x128xf32> to vector<2x8x128xf32>
      %cst = arith.constant dense<0.000000e+00> : vector<8x128xf32>
      %28 = vector.multi_reduction <add>, %27, %cst [0] : vector<2x8x128xf32> to vector<8x128xf32>
      %c0_7 = arith.constant 0 : index
      %c0_8 = arith.constant 0 : index
      %29 = vector.load %arg2[%c0_7, %c0_8] : memref<8x128xf32, #tpu.memory_space<vmem>>, vector<8x128xf32>
      %30 = arith.mulf %28, %29 : vector<8x128xf32>
      %31 = vector.shape_cast %30 : vector<8x128xf32> to vector<1x8x128xf32>
      %cst_9 = arith.constant dense<0.000000e+00> : vector<8x128xf32>
      %32 = vector.multi_reduction <add>, %31, %cst_9 [0] : vector<1x8x128xf32> to vector<8x128xf32>
      %33 = arith.addf %25, %32 : vector<8x128xf32>
      %c0_10 = arith.constant 0 : index
      %c0_11 = arith.constant 0 : index
      %c0_12 = arith.constant 0 : index
      %34 = vector.load %arg5[%c0_10, %c0_11, %c0_12] : memref<1x8x128xf32, #tpu.memory_space<vmem>>, vector<1x8x128xf32>
      %35 = vector.shape_cast %34 : vector<1x8x128xf32> to vector<8x128xf32>
      %36 = vector.shape_cast %33 : vector<8x128xf32> to vector<1x8x128xf32>
      tpu.vector_store %arg5[%c0_10, %c0_11, %c0_12], %36 {strides = array<i32>} : memref<1x8x128xf32, #tpu.memory_space<vmem>>, vector<1x8x128xf32>,
      %c0_13 = arith.constant 0 : index
      %c0_14 = arith.constant 0 : index
      %c0_15 = arith.constant 0 : index
      %37 = vector.load %arg6[%c0_13, %c0_14, %c0_15] : memref<1x8x128xf32, #tpu.memory_space<vmem>>, vector<1x8x128xf32>
      %38 = vector.shape_cast %37 : vector<1x8x128xf32> to vector<8x128xf32>
      %39 = arith.mulf %13, %13 : vector<16x128xf32>
      %40 = vector.shape_cast %39 : vector<16x128xf32> to vector<2x8x128xf32>
      %cst_16 = arith.constant dense<0.000000e+00> : vector<8x128xf32>
      %41 = vector.multi_reduction <add>, %40, %cst_16 [0] : vector<2x8x128xf32> to vector<8x128xf32>
      %c0_17 = arith.constant 0 : index
      %c0_18 = arith.constant 0 : index
      %42 = vector.load %arg3[%c0_17, %c0_18] : memref<8x128xf32, #tpu.memory_space<vmem>>, vector<8x128xf32>
      %43 = arith.mulf %41, %42 : vector<8x128xf32>
      %44 = vector.shape_cast %43 : vector<8x128xf32> to vector<1x8x128xf32>
      %cst_19 = arith.constant dense<0.000000e+00> : vector<8x128xf32>
      %45 = vector.multi_reduction <add>, %44, %cst_19 [0] : vector<1x8x128xf32> to vector<8x128xf32>
      %46 = arith.addf %38, %45 : vector<8x128xf32>
      %c0_20 = arith.constant 0 : index
      %c0_21 = arith.constant 0 : index
      %c0_22 = arith.constant 0 : index
      %47 = vector.load %arg6[%c0_20, %c0_21, %c0_22] : memref<1x8x128xf32, #tpu.memory_space<vmem>>, vector<1x8x128xf32>
      %48 = vector.shape_cast %47 : vector<1x8x128xf32> to vector<8x128xf32>
      %49 = vector.shape_cast %46 : vector<8x128xf32> to vector<1x8x128xf32>
      tpu.vector_store %arg6[%c0_20, %c0_21, %c0_22], %49 {strides = array<i32>} : memref<1x8x128xf32, #tpu.memory_space<vmem>>, vector<1x8x128xf32>,
    } else {
    }
    return
  }
  func.func @transform_0(%arg0: i32, %arg1: i32) -> (i32, i32) {
    %c0_i32 = arith.constant 0 : i32
    %c0_i32_0 = arith.constant 0 : i32
    %c0_i32_1 = arith.constant 0 : i32
    return %c0_i32, %c0_i32_0 : i32, i32
  }
  func.func @transform_1(%arg0: i32, %arg1: i32) -> (i32, i32) {
    %c0_i32 = arith.constant 0 : i32
    %c0_i32_0 = arith.constant 0 : i32
    %c0_i32_1 = arith.constant 0 : i32
    return %c0_i32, %c0_i32_0 : i32, i32
  }
  func.func @transform_2(%arg0: i32, %arg1: i32) -> (i32, i32) {
    %c1_i32 = arith.constant 1 : i32
    %0 = arith.muli %arg0, %c1_i32 : i32
    %1 = arith.addi %0, %arg1 : i32
    %c0_i32 = arith.constant 0 : i32
    %2 = arith.minsi %1, %c0_i32 : i32
    %c0_i32_0 = arith.constant 0 : i32
    %c0_i32_1 = arith.constant 0 : i32
    return %2, %c0_i32_0 : i32, i32
  }
  func.func @transform_3(%arg0: i32, %arg1: i32) -> (i32, i32, i32) {
    %c0_i32 = arith.constant 0 : i32
    %c0_i32_0 = arith.constant 0 : i32
    %c0_i32_1 = arith.constant 0 : i32
    return %arg0, %c0_i32, %c0_i32_0 : i32, i32, i32
  }
  func.func @transform_4(%arg0: i32, %arg1: i32) -> (i32, i32, i32) {
    %c0_i32 = arith.constant 0 : i32
    %c0_i32_0 = arith.constant 0 : i32
    %c0_i32_1 = arith.constant 0 : i32
    return %arg0, %c0_i32, %c0_i32_0 : i32, i32, i32
  }
}

</mosaic_0001>

<bundles_post_ra>
// kernel: tpu_custom_call.1
= control target key start
LH: loop header
LB: loop body
LE: loop exit
PB: predicated region body
PF: predicated region fallthrough
CT: control target
= control target key end

     0   :  { %10 = vsyncpa [#allocation3], 0  ;;  %s1128_s0 = inlined_call_operand.hbm [shape: f32[8,128], index: 0, kind: input, shape index: {}]   ;;  %s1129_s1 = inlined_call_operand.hbm [shape: f32[8,128], index: 1, kind: input, shape index: {}]   ;;  %s1130_s2 = inlined_call_operand.hbm [shape: f32[16,128], index: 2, kind: input, shape index: {}]   ;;  %s1131_s3 = inlined_call_operand.hbm [shape: f32[2,8,128], index: 3, kind: output, shape index: {0}]   ;;  %s1132_s4 = inlined_call_operand.hbm [shape: f32[2,8,128], index: 4, kind: output, shape index: {1}]  }
   0x1   :  { %11 = vsyncpa [#allocation6], 0 }
   0x2   :  { %12 = vsyncpa [#allocation4], 0 }
   0x3   :  { %14 = vsyncpa [#allocation4 + $0x1], 0 }
   0x4   :  { %15 = vsyncpa [#allocation10], 0 }
   0x5   :  { %17 = vsyncpa [#allocation10 + $0x1], 0  ;;  %s896_s15 = smov 0   ;;  %s898_s16 = smov 0  }
   0x6   :  { %s900_s17 = smov 0   ;;  %s902_s18 = smov 0  }
   0x7   :  { %s904_s19 = smov 0   ;;  %s906_s20 = smov 0  }
   0x8   :  { %s908_s21 = smov 0   ;;  %s910_s22 = smov 0  }
   0x9 LB: > { %s935_s23 = sadd.s32 4294967295, %s859_s22   ;;  %s501_s24 = sadd.s32 4294967294, %s859_s22   ;;  %s859_s22 = sphi %s910_s22, %s23_s22   ;;  %s855_s21 = sphi %s908_s21, %s1160_s21   ;;  %s851_s20 = sphi %s906_s20, %s1159_s20   ;;  %s847_s19 = sphi %s904_s19, %s1118_s19   ;;  %s843_s18 = sphi %s902_s18, %s1158_s18   ;;  %s839_s17 = sphi %s900_s17, %s1157_s17   ;;  %s835_s16 = sphi %s898_s16, %s1156_s16   ;;  %s831_s15 = sphi %s896_s15, %s1155_s15  }
   0xa   : > { %p828_p0 = scmp.ne.s32.totalorder %s847_s19, 0  ;;  %p98_p1 = scmp.eq.s32.totalorder %s859_s22, 0 }
   0xb   : > { %p103_p2 = scmp.ne.s32.totalorder %s847_s19, %s843_s18  ;;  %p1133_p3 = scmp.eq.s32.totalorder %s935_s23, 0 }
   0xc   : > { %s116_s25 = sadd.s32 1, %s839_s17  ;;  %p943_p4 = por %p828_p0, %p98_p1 }
   0xd   : > { %p126_p5 = scmp.ne.s32.totalorder %s839_s17, %s835_s16  ;;  %p951_p6 = por %p1133_p3, %p103_p2 }
   0xe   : > { %p127_p7 = scmp.eq.s32.totalorder %s935_s23, 1  ;;  %p132_p8 = scmp.ne.s32.totalorder %s835_s16, %s831_s15 }
   0xf   : > { %s1139_s27 = scalar_select %p951_p6, 1, 0 }
  0x10   : > { %p133_p9 = scmp.eq.s32.totalorder %s501_s24, 1  ;;  %p958_p10 = por %p127_p7, %p126_p5 }
  0x11   : > { %p502_p11 = scmp.ge.s32.totalorder %s859_s22, 1  ;;  %p166_p13 = scmp.lt.s32.totalorder %s859_s22, 3 }
  0x12   : > { %s1140_s28 = scalar_select %p958_p10, 1, 0 }
  0x13   : > { %p963_p12 = por %p133_p9, %p132_p8  ;;  %p968_p0 = pnand %p502_p11, %p166_p13 }
  0x14   : > { %s861_s5 = smov [#allocation2]   ;;  %p557_p5 = scmp.lt.s32.totalorder %s859_s22, 2 }
  0x15   : > { %s1141_s29 = scalar_select %p963_p12, 1, 0 }
  0x16   : > { %s1142_s30 = scalar_select %p968_p0, 1, 0 }
  0x17   : > { %s179_s6 = sshll.u32 %s861_s5, 4  ;;  %p537_p2 = pneg %p968_p0  ;;  %s180_s6 = int_to_ptr.vmem [resolvable:$true] %s179_s6 }
  0x18   : > { %p984_p8 = pnand %p557_p5, %p943_p4  ;;  %s862_s9 = smov [#allocation5]  }
  0x19   : > { %p978_p7 = pnand %p537_p2, %p1133_p3  ;;  %s190_s10 = sshll.u32 %s862_s9, 4  ;;  %s191_s10 = int_to_ptr.vmem [resolvable:$true] %s190_s10 }
  0x1a   : > { %s651_s11 = scalar_lea.vmem %s180_s6, 128  ;;  %p659_p1 = scmp.lt.s32.totalorder %s180_s6, %s180_s6 }
  0x1b   : > { %p642_p9 = pneg %p978_p7  ;;  %p652_p11 = scmp.ne.s32.totalorder %s180_s6, %s651_s11 }
  0x1c   : > { %p660_p3 = scmp.lt.s32.totalorder %s651_s11, %s651_s11 }
  0x1d   : > { %p654_p13 = pnand %p652_p11, %p642_p9 }
  0x1e   : > { %p661_p12 = por %p660_p3, %p659_p1 }
  0x1f   : > { %p655_p2 = pneg %p654_p13 }
  0x21   : > { %p662_p10 = pnand %p661_p12, %p655_p2 }
  0x23   : > { %665 = shalt.err (!%p662_p10)
}
  0x24   : > { %540 = dma.hbm_to_vmem [thread:$0]  (!%p978_p7), %s1128_s0, 128, %s180_s6, [#allocation3]  }
  0x25   : > { %s35_s14 = sadd.s32 1, %s855_s21  ;;  %s677_s18 = scalar_lea.vmem %s191_s10, 128 }
  0x26   : > { %p678_p4 = scmp.ne.s32.totalorder %s191_s10, %s677_s18  ;;  %p685_p13 = scmp.lt.s32.totalorder %s191_s10, %s191_s10 }
  0x27   : > { %p686_p3 = scmp.lt.s32.totalorder %s677_s18, %s677_s18 }
  0x28   : > { %p680_p5 = pnand %p678_p4, %p642_p9 }
  0x29   : > { %p687_p12 = por %p686_p3, %p685_p13 }
  0x2a   : > { %p681_p11 = pneg %p680_p5 }
  0x2c   : > { %p688_p10 = pnand %p687_p12, %p681_p11 }
  0x2e   : > { %691 = shalt.err (!%p688_p10)
}
  0x2f   : > { %543 = dma.hbm_to_vmem [thread:$0]  (!%p978_p7), %s1129_s1, 128, %s191_s10, [#allocation6]  }
  0x30   : > { %p37_p1 = scmp.ge.s32.totalorder %s35_s14, 2  ;;  %s201_s5 = sand.u32 1, %s859_s22  }
  0x31   : > { %s863_s7 = smov [#allocation7]   ;;  %s202_s12 = scalar_lea.sflag [#allocation3], %s201_s5 }
  0x32   : > { %s1162_s14 = smov (%p37_p1, %s35_s14), 0  ;;  %s215_s11 = sshll.u32 %s863_s7, 4  ;;  %s216_s11 = int_to_ptr.vmem [resolvable:$true] %s215_s11 }
  0x33   : > { %s113_s6 = ssub.s32 %s855_s21, %s1162_s14  ;;  %s692_s24 = scalar_lea.hbm %s1130_s2, 256 }
  0x34   : > { %p114_p9 = scmp.eq.s32.totalorder %s113_s6, 0  ;;  %p693_p7 = scmp.ne.s32.totalorder %s1130_s2, %s692_s24 }
  0x35   : > { %p694_p2 = pneg %p984_p8  ;;  %p699_p11 = scmp.lt.s32.totalorder %s692_s24, %s692_s24 }
  0x36   : > { %s1015_s9 = scalar_select %p114_p9, %s839_s17, %s116_s25  }
  0x37   : > { %p695_p4 = pnand %p694_p2, %p693_p7 }
  0x39   : > { %p696_p5 = pneg %p695_p4 }
  0x3b   : > { %p701_p13 = pnand %p699_p11, %p696_p5 }
  0x3d   : > { %704 = shalt.err (!%p701_p13)
}
  0x3e   : > { %s705_s25 = scalar_lea.vmem %s216_s11, 256  ;;  %s712_s5 = scalar_lea.vmem %s216_s11, 512 }
  0x3f   : > { %p706_p3 = scmp.ne.s32.totalorder %s216_s11, %s705_s25  ;;  %p713_p1 = scmp.lt.s32.totalorder %s216_s11, %s216_s11 }
  0x40   : > { %p714_p9 = scmp.lt.s32.totalorder %s712_s5, %s705_s25 }
  0x41   : > { %p708_p12 = pnand %p706_p3, %p694_p2 }
  0x42   : > { %p715_p6 = por %p714_p9, %p713_p1 }
  0x43   : > { %p709_p10 = pneg %p708_p12 }
  0x45   : > { %p716_p0 = pnand %p715_p6, %p709_p10 }
  0x47   : > { %719 = shalt.err (!%p716_p0)
}
  0x48   : > { %s864_s6 = smov 128   ;;  %s865_s7 = smov 8  }
  0x49   : > { %547 = dma.hbm_to_vmem [thread:$0]  (!%p984_p8), %s1130_s2, 256, %s216_s11, %s202_s12, %s864_s6, %s864_s6, %s865_s7  }
  0x4a   : > { %p1145_p7 = scmp.ne.s32.totalorder %s1142_s30, 0 }
  0x4b   : > { %p1146_p2 = scmp.eq.s32.totalorder (!%p1145_p7), %s935_s23, 0 }
  0x4c   : > { %227 = sbr.rel (%p1145_p7) target bundleno = 280 (0x118), region = 32 }
  0x51   : > { %809 = dma.done.wait (%p1146_p2), [#allocation3], 128   ;;  %p1147_p4 = pmov %p1146_p2 }
  0x52   : > { %p1148_p6 = pmov %p1146_p2 }
  0x53   : > { %811 = vsyncadd (%p1147_p4), [#allocation3], 4294967168 }
  0x54   : > { %813 = dma.done.wait (%p1148_p6), [#allocation6], 128   ;;  %p1149_p0 = pmov %p1146_p2 }
  0x55   : > { %s237_s8 = sand.u32 1, %s935_s23   ;;  %s239_s11 = sand.u32 1, %s847_s19  }
  0x56   : > { %815 = vsyncadd (%p1149_p0), [#allocation6], 4294967168  ;;  %s512_s12 = sshll.u32 %s239_s11, 4  ;;  %s238_s30 = scalar_lea.sflag [#allocation3], %s237_s8 }
  0x57   : > { %s241_s24 = scalar_lea.vmem [#allocation7], %s512_s12  ;;  %p1150_p8 = scmp.ne.s32.totalorder %s1139_s27, 0 }
  0x59   : > { %817 = dma.done.wait (%p1150_p8), %s238_s30, 256  }
  0x5a   : > { %819 = vsyncadd (%p1150_p8), %s238_s30, 4294967040  ;;  %s1047_s26 = sand.u32 1, %s835_s16   ;;  %v866_v0 = vmov 0.0   ;;  %p515_p5 = scmp.ge.s32.totalorder %s851_s20, 1 }
  0x5b   : > { %s513_s10 = sshll.u32 %s1047_s26, 3  ;;  %s867_s27 = smov (!%p515_p5), 127  }
  0x5c   : > { %s1050_s25 = scalar_lea.vmem [#allocation8], %s513_s10  ;;  %s1053_s23 = scalar_lea.vmem [#allocation9], %s513_s10 }
  0x5d   : > { %279 = vst [vmem:[%s1050_s25] sm:$0xff] %v866_v0  ;;  %280 = vst [vmem:[%s1053_s23] sm:$0xff] %v866_v0  ;;  %285 = sbr.rel (%p515_p5) target bundleno = 233 (0xe9), region = 52  ;;  %s868_s5 = smov (!%p515_p5), 112  }
  0x62   : > { %v286_v1 = vld [vmem:[%s241_s24] sm:$0xff]  ;;  %v287_v2 = vld [vmem:[%s241_s24 + $0x8] sm:$0xff]  ;;  %v288_v3 = vlaneseq  ;;  %vm308_vm0 = vcmask 1046528  }
  0x63   : > { %292 = vrot.lane.b32.xlu1 %v286_v1, %s867_s27  ;;  %300 = vrot.lane.b32.xlu0 %v286_v1, %s868_s5  ;;  %v334_v17 = vld [vmem:[#allocation5] sm:$0xff]  ;;  %v325_v27 = vld [vmem:[#allocation2] sm:$0xff] }
  0x64   : > { %v289_v6 = vand.u32 127, %v288_v3  ;;  %v330_v23 = vld [vmem:[%s1053_s23] sm:$0xff]  ;;  %v321_v30 = vld [vmem:[%s1050_s25] sm:$0xff] }
  0x66   : > { %vm316_vm1 = vcmp.lt.s32.totalorder %v289_v6, 112 }
  0x67   : > { %294 = vrot.lane.b32.xlu1 %v287_v2, %s867_s27  ;;  %302 = vrot.lane.b32.xlu0 %v287_v2, %s868_s5 }
  0xd5   : > { %v293_v4 = vpop.permute.xlu1 %292  ;;  %v301_v5 = vpop.permute.xlu0 %300 }
  0xd6   : > { %v298_v7 = vsub.f32 %v293_v4, %v286_v1  ;;  %v309_v11 = vrot.slane %v301_v5, 1 }
  0xd8   : > { %v331_v10 = vmul.f32 %v298_v7, %v298_v7 }
  0xd9   : > { %v295_v8 = vpop.permute.xlu1 %294  ;;  %v303_v9 = vpop.permute.xlu0 %302 }
  0xda   : > { %v299_v12 = vsub.f32 %v295_v8, %v287_v2  ;;  %v310_v13 = vrot.slane %v303_v9, 1 }
  0xdc   : > { %v332_v14 = vmul.f32 %v299_v12, %v299_v12  ;;  %v311_v15 = vsel %vm308_vm0, %v309_v11, %v310_v13  ;;  %v315_v16 = vsel %vm308_vm0, %v310_v13, %v309_v11 }
  0xdd   : > { %v317_v18 = vsel %vm316_vm1, %v301_v5, %v311_v15  ;;  %v318_v19 = vsel %vm316_vm1, %v303_v9, %v315_v16 }
  0xde   : > { %v333_v20 = vadd.f32 %v332_v14, %v331_v10  ;;  %v319_v21 = vsub.f32 %v317_v18, %v286_v1  ;;  %v320_v22 = vsub.f32 %v318_v19, %v287_v2 }
  0xe0   : > { %v335_v24 = vmul.f32 %v334_v17, %v333_v20  ;;  %v322_v25 = vmul.f32 %v319_v21, %v319_v21  ;;  %v323_v26 = vmul.f32 %v320_v22, %v320_v22 }
  0xe2   : > { %v337_v28 = vadd.f32 %v335_v24, %v330_v23  ;;  %v324_v29 = vadd.f32 %v323_v26, %v322_v25 }
  0xe4   : > { %338 = vst [vmem:[%s1053_s23] sm:$0xff] %v337_v28  ;;  %v326_v31 = vmul.f32 %v325_v27, %v324_v29 }
  0xe6   : > { %v328_v32 = vadd.f32 %v326_v31, %v321_v30 }
  0xe8   : > { %329 = vst [vmem:[%s1050_s25] sm:$0xff] %v328_v32 }
  0xe9 PF: > { %s1137_s6 = sshll.u32 %s851_s20, 7  ;;  %s358_s8 = sshll.u32 %s1050_s25, 4  ;;  %s359_s8 = int_to_ptr.vmem [resolvable:$true] %s358_s8 }
  0xea   : > { %s356_s18 = scalar_lea.hbm %s1131_s3, %s1137_s6  ;;  %s340_s11 = scalar_lea.sflag [#allocation4], %s1047_s26 }
  0xeb   : > { %s720_s12 = scalar_lea.vmem %s359_s8, 128  ;;  %p1151_p13 = scmp.ne.s32.totalorder %s1140_s28, 0 }
  0xec   : > { %p721_p11 = scmp.ne.s32.totalorder %s359_s8, %s720_s12  ;;  %s869_s30 = smov [#allocation8]  }
  0xed   : > { %s724_s24 = sshll.u32 %s869_s30, 4  ;;  %s725_s24 = int_to_ptr.vmem [resolvable:$false] %s724_s24 }
  0xee   : > { %p722_p3 = pnand %p721_p11, %p1151_p13  ;;  %s726_s10 = scalar_lea.vmem %s725_s24, 256 }
  0xef   : > { %p727_p10 = scmp.lt.s32.totalorder %s359_s8, %s725_s24  ;;  %p728_p1 = scmp.lt.s32.totalorder %s726_s10, %s720_s12 }
  0xf0   : > { %p723_p12 = pneg %p722_p3 }
  0xf1   : > { %p729_p9 = por %p728_p1, %p727_p10 }
  0xf3   : > { %p730_p7 = pnand %p729_p9, %p723_p12 }
  0xf5   : > { %733 = shalt.err (!%p730_p7)
}
  0xf6   : > { %s734_s27 = scalar_lea.hbm %s356_s18, 128  ;;  %s738_s7 = scalar_lea.hbm %s1131_s3, 256 }
  0xf7   : > { %p735_p2 = scmp.ne.s32.totalorder %s356_s18, %s734_s27  ;;  %p739_p0 = scmp.lt.s32.totalorder %s356_s18, %s1131_s3 }
  0xf8   : > { %p740_p8 = scmp.lt.s32.totalorder %s738_s7, %s734_s27 }
  0xf9   : > { %p736_p4 = pnand %p735_p2, %p1151_p13 }
  0xfa   : > { %p741_p5 = por %p740_p8, %p739_p0 }
  0xfb   : > { %p737_p6 = pneg %p736_p4 }
  0xfd   : > { %p742_p11 = pnand %p741_p5, %p737_p6 }
  0xff   : > { %745 = shalt.err (!%p742_p11)
}
 0x100   : > { %533 = dma.vmem_to_hbm [thread:$0]  (%p1151_p13), %s359_s8, 128, %s356_s18, %s340_s11  }
 0x101   : > { %s1152_s12 = sshll.u32 %s851_s20, 7  ;;  %s371_s25 = sshll.u32 %s1053_s23, 4  ;;  %s372_s25 = int_to_ptr.vmem [resolvable:$true] %s371_s25 }
 0x102   : > { %s369_s10 = scalar_lea.hbm %s1132_s4, %s1152_s12  ;;  %s345_s6 = scalar_lea.sflag [#allocation10], %s1047_s26 }
 0x103   : > { %s746_s5 = scalar_lea.vmem %s372_s25, 128  ;;  %s870_s27 = smov [#allocation9]  }
 0x104   : > { %p747_p3 = scmp.ne.s32.totalorder %s372_s25, %s746_s5  ;;  %s750_s7 = sshll.u32 %s870_s27, 4  ;;  %s751_s7 = int_to_ptr.vmem [resolvable:$false] %s750_s7 }
 0x105   : > { %s752_s13 = scalar_lea.vmem %s751_s7, 256  ;;  %p753_p1 = scmp.lt.s32.totalorder %s372_s25, %s751_s7 }
 0x106   : > { %p748_p12 = pnand %p747_p3, %p1151_p13  ;;  %p754_p9 = scmp.lt.s32.totalorder %s752_s13, %s746_s5 }
 0x108   : > { %p749_p10 = pneg %p748_p12  ;;  %p755_p7 = por %p754_p9, %p753_p1 }
 0x10a   : > { %p756_p2 = pnand %p755_p7, %p749_p10 }
 0x10c   : > { %759 = shalt.err (!%p756_p2)
}
 0x10d   : > { %s760_s20 = scalar_lea.hbm %s369_s10, 128  ;;  %s764_s18 = scalar_lea.hbm %s1132_s4, 256 }
 0x10e   : > { %p761_p4 = scmp.ne.s32.totalorder %s369_s10, %s760_s20  ;;  %p765_p8 = scmp.lt.s32.totalorder %s369_s10, %s1132_s4 }
 0x10f   : > { %p766_p5 = scmp.lt.s32.totalorder %s764_s18, %s760_s20 }
 0x110   : > { %p762_p6 = pnand %p761_p4, %p1151_p13 }
 0x111   : > { %p767_p11 = por %p766_p5, %p765_p8 }
 0x112   : > { %p763_p0 = pneg %p762_p6 }
 0x114   : > { %p768_p3 = pnand %p767_p11, %p763_p0 }
 0x116   : > { %771 = shalt.err (!%p768_p3)
}
 0x117   : > { %534 = dma.vmem_to_hbm [thread:$0]  (%p1151_p13), %s372_s25, 128, %s369_s10, %s345_s6  }
 0x118 PF: > { %s383_s12 = sand.u32 1, %s831_s15   ;;  %p1153_p12 = scmp.ne.s32.totalorder %s1141_s29, 0 }
 0x119   : > { %p1154_p10 = scmp.ge.s32.totalorder %s859_s22, 2  ;;  %s384_s30 = scalar_lea.sflag [#allocation4], %s383_s12 }
 0x11b   : > { %p549_p1 = pnand %p1154_p10, %p1153_p12 }
 0x11d   : > { %p550_p9 = pneg %p549_p1 }
 0x11f   : > { %821 = dma.done.wait (%p550_p9), %s384_s30, 128  }
 0x120   : > { %823 = vsyncadd (%p550_p9), %s384_s30, 4294967168  ;;  %s393_s24 = scalar_lea.sflag [#allocation10], %s383_s12 }
 0x121   : > { %825 = dma.done.wait (%p550_p9), %s393_s24, 128  }
 0x122   : > { %827 = vsyncadd (%p550_p9), %s393_s24, 4294967168  ;;  %s23_s22 = sadd.s32 1, %s859_s22   ;;  %s1155_s15 = smov %s835_s16 }
 0x123   : > { %p20_p7 = scmp.ge.s32.totalorder %s23_s22, 4   ;;  %s1156_s16 = smov %s839_s17 }
 0x124   : > { %s1157_s17 = smov %s1015_s9  ;;  %s1158_s18 = smov %s847_s19 }
 0x125   : > { %s1118_s19 = smov 0   ;;  %s1159_s20 = smov %s855_s21 }
 0x126   : > { %s1160_s21 = smov %s1162_s14  ;;  %22 = sbr.rel (!%p20_p7) target bundleno = 9 (0x9), region = 109 }
 0x12b   :  { %398 = vsyncpa [#allocation3], 1 }
 0x12c   :  { %400 = vsyncpa [#allocation3 + $0x1], 1 }
 0x12d   :  { %401 = vsyncpa [#allocation6], 1 }
 0x12e   :  { %402 = vsyncpa [#allocation4], 1 }
 0x12f   :  { %404 = vsyncpa [#allocation4 + $0x1], 1 }
 0x130   :  { %405 = vsyncpa [#allocation10], 1 }
 0x131   :  { %407 = vsyncpa [#allocation10 + $0x1], 1 }

</bundles_post_ra>
